<compile_context>
chip_gen: v7x
topology: tpu7x:2x2x1
jax: 0.10.0
libtpu: 0.0.40
codegen_flags: <defaults>
</compile_context>

<pallas_src>
import jax
import jax.numpy as jnp
from jax import lax
from jax.experimental import pallas as pl
from jax.experimental.pallas import tpu as pltpu

_EPS = 1e-12  # F.normalize default eps


def _round_up(a, b):
    return (a + b - 1) // b * b


def _rmsnorm_kernel(x_ref, g_ref, o_ref):
    # x_ref: (ROW_TILE, Dp), g_ref: (1, Dp) f32 (already scaled by sqrt(dim)),
    # o_ref: (ROW_TILE, Dp).
    x = x_ref[...].astype(jnp.float32)
    sumsq = jnp.sum(x * x, axis=-1, keepdims=True)            # (ROW_TILE, 1)
    # 1 / max(||x||, eps) == rsqrt(max(||x||^2, eps^2))  (sqrt is monotone).
    inv = lax.rsqrt(jnp.maximum(sumsq, _EPS * _EPS))          # EUP, not VALU divide
    out = (x * inv) * g_ref[...]                              # gamma carries sqrt(dim)
    o_ref[...] = out.astype(o_ref.dtype)


def _vmem_capacity_bytes():
    try:
        info = pltpu.get_tpu_info()
        cap = getattr(info, "vmem_capacity_bytes", None)
        if cap:
            return int(cap)
    except Exception:
        pass
    # Conservative fallback: v7x has the smallest physical VMEM (64 MiB / TC).
    return 64 * 1024 * 1024


def _choose_row_tile(rows, dim_padded, itemsize, vmem_budget):
    # Sub-32-bit dtypes pack rows along sublanes: keep the tile a full vreg group.
    min_tile = {4: 8, 2: 16, 1: 32}.get(itemsize, 8)
    # Per-row VMEM footprint: double-buffered input + double-buffered output
    # + one f32 upcast temporary.
    per_row_bytes = dim_padded * (2 * itemsize + 2 * itemsize + 4)
    tile = 1024
    while tile > min_tile and tile * per_row_bytes > vmem_budget:
        tile //= 2
    # Keep at least 2 grid steps (so the second TensorCore on v7x gets work)
    # whenever the problem has enough rows to split.
    while tile > min_tile and _round_up(rows, tile) // tile < 2 and rows > min_tile:
        tile //= 2
    return max(tile, min_tile)


def rms_norm(x, gamma):
    """RMSNorm over the last axis of x. gamma has shape (dim,)."""
    dim = x.shape[-1]
    assert gamma.shape == (dim,)
    scale = float(dim) ** 0.5

    orig_shape = x.shape
    rows = 1
    for s in orig_shape[:-1]:
        rows *= s
    x2 = x.reshape(rows, dim)

    # Lane-dense feature dimension: pad D up to a multiple of 128.
    dim_p = _round_up(dim, 128)

    itemsize = jnp.dtype(x.dtype).itemsize
    vmem_cap = _vmem_capacity_bytes()
    vmem_budget = int(vmem_cap * 0.5)  # headroom for compiler scratch / pipeline
    row_tile = _choose_row_tile(rows, dim_p, itemsize, vmem_budget)

    # Pad rows up to a tile multiple (padded rows are all-zero -> finite output,
    # sliced off below).
    rows_p = _round_up(rows, row_tile)

    if rows_p != rows or dim_p != dim:
        x2 = jnp.pad(x2, ((0, rows_p - rows), (0, dim_p - dim)))

    # Fold sqrt(dim) into gamma once (only D elements; cheap wrapper work).
    g2 = (gamma.astype(jnp.float32) * scale).reshape(1, dim)
    if dim_p != dim:
        g2 = jnp.pad(g2, ((0, 0), (0, dim_p - dim)))

    grid = (rows_p // row_tile,)

    # Request enough scoped VMEM for the chosen tile, staying below physical.
    tile_bytes = row_tile * dim_p * (2 * itemsize + 2 * itemsize + 4) + dim_p * 4
    vmem_limit = min(int(vmem_cap * 0.9), max(32 * 1024 * 1024, 2 * tile_bytes))

    out = pl.pallas_call(
        _rmsnorm_kernel,
        out_shape=jax.ShapeDtypeStruct((rows_p, dim_p), x.dtype),
        grid_spec=pltpu.PrefetchScalarGridSpec(
            num_scalar_prefetch=0,
            grid=grid,
            in_specs=[
                pl.BlockSpec((row_tile, dim_p), lambda i: (i, 0)),
                pl.BlockSpec((1, dim_p), lambda i: (0, 0)),  # gamma stays resident
            ],
            out_specs=pl.BlockSpec((row_tile, dim_p), lambda i: (i, 0)),
        ),
        compiler_params=pltpu.CompilerParams(
            dimension_semantics=("parallel",),
            vmem_limit_bytes=vmem_limit,
        ),
    )(x2, g2)

    if rows_p != rows or dim_p != dim:
        out = out[:rows, :dim]
    return out.reshape(orig_shape)


def _reference_rms_norm(x, gamma):
    # Pure-JAX reference mirroring F.normalize(x, dim=-1) * sqrt(dim) * gamma.
    dim = x.shape[-1]
    xf = x.astype(jnp.float32)
    norm = jnp.sqrt(jnp.sum(xf * xf, axis=-1, keepdims=True))
    normed = xf / jnp.maximum(norm, _EPS)
    return (normed * (float(dim) ** 0.5) * gamma.astype(jnp.float32)).astype(x.dtype)


if __name__ == "__main__":
    key = jax.random.PRNGKey(0)
    batch, seq, hidden = 2, 8, 32

    x = jax.random.normal(key, (batch, seq, hidden), dtype=jnp.float32)
    # Deterministic parameter init matching nn.Parameter(torch.ones(dim)).
    gamma = jnp.ones((hidden,), dtype=jnp.float32)

    out = rms_norm(x, gamma)
    out = jax.block_until_ready(out)

    ref = _reference_rms_norm(x, gamma)
    assert out.shape == x.shape
    assert jnp.allclose(out, ref, atol=1e-5, rtol=1e-5)

    print("KERNEL_OK")
</pallas_src>

<mosaic_0001>
module attributes {stable_mosaic.version = 11 : i64} {
  func.func @_rmsnorm_kernel(%arg0: i32, %arg1: memref<8x128xf32, #tpu.memory_space<vmem>>, %arg2: memref<1x128xf32, #tpu.memory_space<vmem>>, %arg3: memref<8x128xf32, #tpu.memory_space<vmem>>) attributes {dimension_semantics = [#tpu.dimension_semantics<parallel>], iteration_bounds = array<i64: 2>, scalar_prefetch = 0 : i64, scratch_operands = 0 : i64, tpu.core_type = #tpu.core_type<tc>, window_params = [{transform_indices = @transform_0, window_bounds = array<i64: 8, 128>}, {pipeline_mode = #tpu.pipeline_mode<synchronous>, transform_indices = @transform_1, window_bounds = array<i64: 1, 128>}, {transform_indices = @transform_2, window_bounds = array<i64: 8, 128>}]} {
    %c0 = arith.constant 0 : index
    %c0_0 = arith.constant 0 : index
    %0 = vector.load %arg1[%c0, %c0_0] : memref<8x128xf32, #tpu.memory_space<vmem>>, vector<8x128xf32>
    %1 = arith.mulf %0, %0 : vector<8x128xf32>
    %cst = arith.constant dense<0.000000e+00> : vector<8xf32>
    %2 = vector.multi_reduction <add>, %1, %cst [1] : vector<8x128xf32> to vector<8xf32>
    %3 = vector.shape_cast %2 : vector<8xf32> to vector<8x1xf32>
    %cst_1 = arith.constant 1.000000e-24 : f32
    %4 = vector.broadcast %cst_1 : f32 to vector<8x1xf32>
    %5 = arith.maximumf %3, %4 : vector<8x1xf32>
    %6 = math.rsqrt %5 : vector<8x1xf32>
    %7 = vector.broadcast %6 : vector<8x1xf32> to vector<8x128xf32>
    %8 = arith.mulf %0, %7 : vector<8x128xf32>
    %c0_2 = arith.constant 0 : index
    %c0_3 = arith.constant 0 : index
    %9 = vector.load %arg2[%c0_2, %c0_3] : memref<1x128xf32, #tpu.memory_space<vmem>>, vector<1x128xf32>
    %10 = vector.broadcast %9 : vector<1x128xf32> to vector<8x128xf32>
    %11 = arith.mulf %8, %10 : vector<8x128xf32>
    %c0_4 = arith.constant 0 : index
    %c0_5 = arith.constant 0 : index
    %12 = vector.load %arg3[%c0_4, %c0_5] : memref<8x128xf32, #tpu.memory_space<vmem>>, vector<8x128xf32>
    tpu.vector_store %arg3[%c0_4, %c0_5], %11 {strides = array<i32>} : memref<8x128xf32, #tpu.memory_space<vmem>>, vector<8x128xf32>,
    return
  }
  func.func @transform_0(%arg0: i32) -> (i32, i32) {
    %c0_i32 = arith.constant 0 : i32
    %c0_i32_0 = arith.constant 0 : i32
    return %arg0, %c0_i32 : i32, i32
  }
  func.func @transform_1(%arg0: i32) -> (i32, i32) {
    %c0_i32 = arith.constant 0 : i32
    %c0_i32_0 = arith.constant 0 : i32
    %c0_i32_1 = arith.constant 0 : i32
    return %c0_i32, %c0_i32_0 : i32, i32
  }
  func.func @transform_2(%arg0: i32) -> (i32, i32) {
    %c0_i32 = arith.constant 0 : i32
    %c0_i32_0 = arith.constant 0 : i32
    return %arg0, %c0_i32 : i32, i32
  }
}

</mosaic_0001>

<bundles_post_ra>
// kernel: tpu_custom_call.1
= control target key start
LH: loop header
LB: loop body
LE: loop exit
PB: predicated region body
PF: predicated region fallthrough
CT: control target
= control target key end

     0   :  { %7 = vsyncpa [#allocation3], 0  ;;  %s599_s0 = inlined_call_operand.hbm [shape: f32[16,128], index: 0, kind: input, shape index: {}]   ;;  %s600_s1 = inlined_call_operand.vmem [shape: f32[1,128], index: 1, kind: input, shape index: {}]   ;;  %s601_s2 = inlined_call_operand.hbm [shape: f32[16,128], index: 2, kind: output, shape index: {}]  }
   0x1   :  { %9 = vsyncpa [#allocation3 + $0x1], 0 }
   0x2   :  { %10 = vsyncpa [#allocation4], 0 }
   0x3   :  { %12 = vsyncpa [#allocation4 + $0x1], 0  ;;  %s435_s9 = smov 0   ;;  %s437_s10 = smov 0  }
   0x4   :  { %s439_s11 = smov 0   ;;  %s441_s12 = smov 0  }
   0x5 LB: > { %s456_s13 = sadd.s32 4294967295, %s416_s12   ;;  %s259_s14 = sadd.s32 4294967294, %s416_s12   ;;  %s416_s12 = sphi %s441_s12, %s616_s12   ;;  %s412_s11 = sphi %s439_s11, %s615_s11   ;;  %s408_s10 = sphi %s437_s10, %s614_s10   ;;  %s404_s9 = sphi %s435_s9, %s613_s9  }
   0x6   : > { %s460_s15 = sadd.s32 1, %s416_s12   ;;  %s25_s16 = sadd.s32 1, %s412_s11 }
   0x7   : > { %s22_s17 = ssub.s32 %s416_s12, %s460_s15  ;;  %p32_p0 = scmp.ne.s32.totalorder %s412_s11, %s408_s10 }
   0x8   : > { %p23_p1 = scmp.eq.s32.totalorder %s22_s17, 0  ;;  %p33_p2 = scmp.eq.s32.totalorder %s416_s12, 0 }
   0x9   : > { %p38_p3 = scmp.ne.s32.totalorder %s408_s10, %s404_s9  ;;  %p39_p4 = scmp.eq.s32.totalorder %s456_s13, 0 }
   0xa   : > { %s472_s18 = scalar_select %p23_p1, %s412_s11, %s25_s16  }
   0xb   : > { %p474_p5 = por %p33_p2, %p32_p0  ;;  %p478_p6 = por %p39_p4, %p38_p3 }
   0xc   : > { %p83_p7 = scmp.eq.s32.totalorder %s456_s13, 1  ;;  %p89_p8 = scmp.eq.s32.totalorder %s259_s14, 1 }
   0xd   : > { %p284_p10 = scmp.lt.s32.totalorder %s416_s12, 2  ;;  %s112_s23 = sand.u32 1, %s412_s11  }
   0xe   : > { %p485_p11 = por %p83_p7, %p32_p0  ;;  %p489_p12 = por %p89_p8, %p38_p3 }
   0xf   : > { %s263_s24 = sshll.u32 %s416_s12, 7  ;;  %s262_s25 = sshll.u32 %s112_s23, 3 }
  0x10   : > { %s605_s21 = scalar_select %p485_p11, 1, 0 }
  0x11   : > { %s606_s22 = scalar_select %p489_p12, 1, 0 }
  0x12   : > { %s498_s28 = scalar_lea.hbm %s599_s0, %s263_s24  ;;  %s116_s29 = scalar_lea.vmem [#allocation2], %s262_s25 }
  0x13   : > { %s123_s30 = sshll.u32 %s116_s29, 4  ;;  %p502_p13 = pnand %p284_p10, %p474_p5  ;;  %s506_s30 = int_to_ptr.vmem [resolvable:$true] %s123_s30 }
  0x14   : > { %s113_s4 = scalar_lea.sflag [#allocation3], %s112_s23  ;;  %s320_s5 = scalar_lea.hbm %s498_s28, 128 }
  0x15   : > { %p321_p2 = scmp.ne.s32.totalorder %s498_s28, %s320_s5  ;;  %p322_p3 = pneg %p502_p13 }
  0x16   : > { %s325_s8 = scalar_lea.hbm %s599_s0, 256  ;;  %p326_p5 = scmp.lt.u32.totalorder %s498_s28, %s599_s0 }
  0x17   : > { %p323_p4 = pnand %p322_p3, %p321_p2  ;;  %p327_p8 = scmp.lt.u32.totalorder %s325_s8, %s320_s5 }
  0x18   : > { %p329_p9 = scmp.lt.u32.totalorder %s320_s5, %s498_s28 }
  0x19   : > { %p324_p7 = pneg %p323_p4  ;;  %p328_p10 = por %p327_p8, %p326_p5 }
  0x1b   : > { %p330_p0 = por %p329_p9, %p328_p10 }
  0x1d   : > { %p331_p1 = pnand %p330_p0, %p324_p7 }
  0x1f   : > { %334 = shalt.err (!%p331_p1)
}
  0x20   : > { %s335_s17 = scalar_lea.vmem %s506_s30, 128  ;;  %s418_s19 = smov [#allocation2]  }
  0x21   : > { %p336_p2 = scmp.ne.s32.totalorder %s506_s30, %s335_s17  ;;  %s340_s23 = sshll.u32 %s418_s19, 4  ;;  %s341_s23 = int_to_ptr.vmem [resolvable:$false] %s340_s23 }
  0x22   : > { %s342_s24 = scalar_lea.vmem %s341_s23, 256  ;;  %p343_p11 = scmp.lt.s32.totalorder %s506_s30, %s341_s23 }
  0x23   : > { %p338_p4 = pnand %p336_p2, %p322_p3  ;;  %p344_p5 = scmp.lt.s32.totalorder %s342_s24, %s335_s17 }
  0x25   : > { %p339_p12 = pneg %p338_p4  ;;  %p345_p8 = por %p344_p5, %p343_p11 }
  0x27   : > { %p346_p9 = pnand %p345_p8, %p339_p12 }
  0x29   : > { %349 = shalt.err (!%p346_p9)
}
  0x2a   : > { %279 = dma.hbm_to_vmem [thread:$0]  (!%p502_p13), %s498_s28, 128, %s506_s30, %s113_s4  }
  0x2b   : > { %p608_p0 = scmp.lt.s32.totalorder %s416_s12, 3  ;;  %p609_p1 = scmp.ge.s32.totalorder %s416_s12, 1 }
  0x2d   : > { %p129_p3 = pnand %p609_p1, %p608_p0 }
  0x2e   : > { %s540_s25 = sand.u32 (!%p129_p3), 1, %s408_s10  }
  0x2f   : > { %132 = sbr.rel (%p129_p3) target bundleno = 231 (0xe7), region = 28  ;;  %s265_s26 = sshll.u32 (!%p129_p3), %s540_s25, 3 }
  0x30   : > { %s135_s27 = scalar_lea.sflag (!%p129_p3), [#allocation3], %s540_s25  ;;  %s138_s29 = scalar_lea.vmem (!%p129_p3), [#allocation2], %s265_s26 }
  0x36   : > { %395 = dma.done.wait (%p478_p6), %s135_s27, 128  }
  0x37   : > { %397 = vsyncadd (%p478_p6), %s135_s27, 4294967168  ;;  %v159_v0 = vld [vmem:[%s138_s29] sm:$0xff]  ;;  %s269_s3 = sshll.u32 %s456_s13, 7  ;;  %s158_s4 = scalar_lea.vmem [#allocation5], %s265_s26 }
  0x38   : > { %v160_v1 = vmul.f32 %v159_v0, %v159_v0  ;;  %v267_v5 = vld [vmem:[%s600_s1] ss:$0 sm:$0xff]  ;;  %s189_s5 = sshll.u32 %s158_s4, 4  ;;  %s555_s7 = scalar_lea.hbm %s601_s2, %s269_s3  ;;  %s557_s5 = int_to_ptr.vmem [resolvable:$true] %s189_s5 }
  0x39   : > { %s176_s8 = scalar_lea.sflag [#allocation4], %s540_s25  ;;  %s350_s14 = scalar_lea.vmem %s557_s5, 128 }
  0x3a   : > { %161 = vadd.xlane.f32.xlu0 %v160_v1  ;;  %p351_p6 = scmp.ne.s32.totalorder %s557_s5, %s350_s14  ;;  %p610_p11 = scmp.ne.s32.totalorder %s605_s21, 0 }
  0x3b   : > { %s419_s13 = smov [#allocation5]  }
  0x3c   : > { %p352_p12 = pnand %p351_p6, %p610_p11  ;;  %s354_s16 = sshll.u32 %s419_s13, 4  ;;  %s355_s16 = int_to_ptr.vmem [resolvable:$false] %s354_s16 }
  0x3d   : > { %s356_s17 = scalar_lea.vmem %s355_s16, 256  ;;  %p357_p7 = scmp.lt.s32.totalorder %s557_s5, %s355_s16 }
  0x3e   : > { %p353_p13 = pneg %p352_p12  ;;  %p358_p10 = scmp.lt.s32.totalorder %s356_s17, %s350_s14 }
  0x40   : > { %p359_p2 = por %p358_p10, %p357_p7 }
  0x42   : > { %p360_p4 = pnand %p359_p2, %p353_p13 }
  0xc7   : > { %v162_v2 = vpop.xlane.xlu0 %161 }
  0xc8   : > { %v163_v3 = vmax.f32 %v162_v2, 1e-24 }
  0xca   : > { %318 = vrsqrt.f32 %v163_v3 }
  0xd4   : > { %v319_v4 = vpop.eup %318 }
  0xd5   : > { %v165_v6 = vmul.f32 %v319_v4, %v159_v0 }
  0xd7   : > { %v173_v7 = vmul.f32 %v267_v5, %v165_v6 }
  0xd9   : > { %174 = vst [vmem:[%s158_s4] sm:$0xff] %v173_v7 }
  0xda   : > { %363 = shalt.err (!%p360_p4)
}
  0xdb   : > { %s364_s19 = scalar_lea.hbm %s555_s7, 128  ;;  %s368_s25 = scalar_lea.hbm %s601_s2, 256 }
  0xdc   : > { %p365_p5 = scmp.ne.s32.totalorder %s555_s7, %s364_s19  ;;  %p369_p0 = scmp.lt.u32.totalorder %s555_s7, %s601_s2 }
  0xdd   : > { %p370_p1 = scmp.lt.u32.totalorder %s368_s25, %s364_s19  ;;  %p372_p6 = scmp.lt.u32.totalorder %s364_s19, %s555_s7 }
  0xde   : > { %p366_p8 = pnand %p365_p5, %p610_p11 }
  0xdf   : > { %p371_p3 = por %p370_p1, %p369_p0 }
  0xe0   : > { %p367_p9 = pneg %p366_p8 }
  0xe1   : > { %p373_p12 = por %p372_p6, %p371_p3 }
  0xe3   : > { %p374_p13 = pnand %p373_p12, %p367_p9 }
  0xe5   : > { %377 = shalt.err (!%p374_p13)
}
  0xe6   : > { %274 = dma.vmem_to_hbm [thread:$0]  (%p610_p11), %s557_s5, 128, %s555_s7, %s176_s8  }
  0xe7 PF: > { %s201_s29 = sand.u32 1, %s404_s9   ;;  %p611_p7 = scmp.ne.s32.totalorder %s606_s22, 0 }
  0xe8   : > { %p612_p10 = scmp.ge.s32.totalorder %s416_s12, 2  ;;  %s202_s28 = scalar_lea.sflag [#allocation4], %s201_s29 }
  0xea   : > { %p281_p2 = pnand %p612_p10, %p611_p7 }
  0xec   : > { %399 = dma.done.wait (!%p281_p2), %s202_s28, 128  }
  0xed   : > { %401 = vsyncadd (!%p281_p2), %s202_s28, 4294967168  ;;  %p15_p4 = scmp.ge.s32.totalorder %s460_s15, 4   ;;  %s613_s9 = smov %s408_s10 }
  0xee   : > { %s614_s10 = smov %s412_s11  ;;  %s615_s11 = smov %s472_s18 }
  0xef   : > { %s616_s12 = smov %s460_s15  ;;  %17 = sbr.rel (!%p15_p4) target bundleno = 5 (0x5), region = 73 }
  0xf6   :  { %207 = vsyncpa [#allocation3], 1 }
  0xf7   :  { %209 = vsyncpa [#allocation3 + $0x1], 1 }
  0xf8   :  { %210 = vsyncpa [#allocation4], 1 }
  0xf9   :  { %212 = vsyncpa [#allocation4 + $0x1], 1 }

</bundles_post_ra>
